<compile_context>
chip_gen: v7x
topology: tpu7x:2x2x1
jax: 0.10.0
libtpu: 0.0.40
codegen_flags: <defaults>
</compile_context>

<pallas_src>
import functools

import jax
import jax.numpy as jnp
from jax import lax
from jax.experimental import pallas as pl
from jax.experimental.pallas import tpu as pltpu

EPS = 1e-5      # PyTorch BatchNorm1d default eps
TILE_N = 512    # output-feature tile (full 256-wide MXU on v6e/v7x, halves x re-stream)
TILE_K = 512    # contraction tile (amortizes per-grid-step overhead)
TILE_D = 512    # correlation-matrix tile for the loss


# --------------------------------------------------------------------------
# helpers
# --------------------------------------------------------------------------
def _tile_size(dim, target, align=128):
    """Largest divisor of `dim` that is <= target and a multiple of `align`,
    else the full dim (block == full extent is always legal)."""
    if dim <= target:
        return dim
    t = (target // align) * align
    while t >= align:
        if dim % t == 0:
            return t
        t -= align
    return dim


def _vmem_limit(working_bytes):
    # Derive the scoped-VMEM cap from the chip's physical VMEM: ~48 MiB on v7x
    # (64 MiB physical), ~96 MiB on v5e/v6e (128 MiB physical).
    try:
        phys = int(pltpu.get_tpu_info().vmem_capacity_bytes)
    except Exception:
        phys = 64 * 1024 * 1024   # v7x worst case -> always-safe fallback
    cap = (phys * 3) // 4
    return int(min(cap, max(32 * 1024 * 1024, 2 * working_bytes)))


# --------------------------------------------------------------------------
# Tiled linear with optional fused per-view epilogues:
#   epilogue == "none"    : plain matmul
#   epilogue == "bn_relu" : BatchNorm1d(gamma, beta) + ReLU per view
#   epilogue == "bn"      : affine-free BatchNorm1d per view (feeds the loss)
# --------------------------------------------------------------------------
def _linear_kernel(*refs, epilogue, num_views):
    if epilogue == "bn_relu":
        x_ref, w_ref, g_ref, b_ref, o_ref, acc_ref = refs
    else:
        x_ref, w_ref, o_ref, acc_ref = refs

    k = pl.program_id(1)

    @pl.when(k == 0)
    def _init():
        acc_ref[...] = jnp.zeros_like(acc_ref)

    acc_ref[...] += jnp.dot(x_ref[...], w_ref[...],
                            preferred_element_type=jnp.float32)

    @pl.when(k == pl.num_programs(1) - 1)
    def _finalize():
        if epilogue == "none":
            o_ref[...] = acc_ref[...].astype(o_ref.dtype)
        else:
            # BN statistics are per-feature over each view's batch only (the
            # PyTorch module runs the projector / final BN separately per view).
            # NOTE: this assumes the output block holds the FULL batch (no M
            # tiling); an M-tiled variant would need a two-pass sum/sumsq scheme.
            rows = acc_ref.shape[0] // num_views
            for v in range(num_views):
                a = acc_ref[pl.ds(v * rows, rows), :]
                mean = jnp.mean(a, axis=0, keepdims=True)
                var = jnp.mean((a - mean) ** 2, axis=0, keepdims=True)
                y = (a - mean) * lax.rsqrt(var + EPS)
                if epilogue == "bn_relu":
                    y = jnp.maximum(y * g_ref[...] + b_ref[...], 0.0)
                o_ref[pl.ds(v * rows, rows), :] = y.astype(o_ref.dtype)


def pallas_linear(x, w, gamma=None, beta=None, *, epilogue="none", num_views=2,
                  out_dtype=jnp.bfloat16, tile_n=TILE_N, tile_k=TILE_K):
    M, K = x.shape
    K2, N = w.shape
    assert K == K2
    tn = _tile_size(N, tile_n)
    tk = _tile_size(K, tile_k)
    grid = (N // tn, K // tk)

    in_specs = [
        pl.BlockSpec((M, tk), lambda n, k: (0, k)),
        pl.BlockSpec((tk, tn), lambda n, k: (k, n)),
    ]
    args = [x, w]
    if epilogue == "bn_relu":
        in_specs += [
            pl.BlockSpec((1, tn), lambda n, k: (0, n)),
            pl.BlockSpec((1, tn), lambda n, k: (0, n)),
        ]
        args += [gamma, beta]

    xb = jnp.dtype(x.dtype).itemsize
    wb = jnp.dtype(w.dtype).itemsize
    ob = jnp.dtype(out_dtype).itemsize
    # x is re-streamed once per n-tile: account for it honestly in the cost
    # estimate (this is the dominant HBM stream at production shapes).
    bytes_accessed = (N // tn) * M * K * xb + K * N * wb + M * N * ob
    working = 2 * (M * tk * xb + tk * tn * wb) + 2 * M * tn * ob + M * tn * 4
    cost = pl.CostEstimate(flops=int(2 * M * N * K), transcendentals=0,
                           bytes_accessed=int(bytes_accessed))

    kernel = functools.partial(_linear_kernel, epilogue=epilogue,
                               num_views=num_views)
    return pl.pallas_call(
        kernel,
        out_shape=jax.ShapeDtypeStruct((M, N), out_dtype),
        grid=grid,
        in_specs=in_specs,
        out_specs=pl.BlockSpec((M, tn), lambda n, k: (0, n)),
        scratch_shapes=[pltpu.VMEM((M, tn), jnp.float32)],
        compiler_params=pltpu.CompilerParams(
            dimension_semantics=("parallel", "arbitrary"),
            vmem_limit_bytes=_vmem_limit(working)),
        cost_estimate=cost,
    )(*args)


# --------------------------------------------------------------------------
# Barlow-Twins loss, tiled over the (D, D) correlation matrix.
# Input z is the fused-BN output [2B, D] (bf16): rows [:B] = bn(z1),
# rows [B:] = bn(z2).  Per-i partial (on, off) sums are emitted so the i axis
# can shard across v7x's two TensorCores; the tiny reduction happens in XLA.
# --------------------------------------------------------------------------
def _barlow_loss_kernel(z1_ref, z2_ref, o_ref, on_ref, off_ref, *, inv_batch):
    i = pl.program_id(0)
    j = pl.program_id(1)

    @pl.when(j == 0)
    def _init():
        on_ref[...] = jnp.zeros_like(on_ref)
        off_ref[...] = jnp.zeros_like(off_ref)

    # c tile of bn(z1).T @ bn(z2) / batch_size.  Contract over axis 0 of both
    # (B, td) blocks (MXU-native transposed-LHS matmul) -> no XLA transpose.
    c = lax.dot_general(z1_ref[...], z2_ref[...],
                        (((0,), (0,)), ((), ())),
                        preferred_element_type=jnp.float32) * inv_batch

    off_ref[...] += jnp.sum(c * c)

    @pl.when(i == j)
    def _diag():
        td = c.shape[0]
        row = lax.broadcasted_iota(jnp.int32, (td, td), 0)
        col = lax.broadcasted_iota(jnp.int32, (td, td), 1)
        is_diag = row == col
        diag_c = jnp.where(is_diag, c, 0.0)
        on_ref[...] += jnp.sum(jnp.where(is_diag, (c - 1.0) ** 2, 0.0))
        off_ref[...] -= jnp.sum(diag_c * diag_c)

    @pl.when(j == pl.num_programs(1) - 1)
    def _finalize():
        lane = lax.broadcasted_iota(jnp.int32, (1, 1, 128), 2)
        o_ref[...] = jnp.where(lane == 0, on_ref[...],
                               jnp.where(lane == 1, off_ref[...], 0.0))


def pallas_barlow_loss(z, batch_size, lambd, tile_d=TILE_D):
    M, D = z.shape
    B = M // 2
    td = _tile_size(D, tile_d)
    nd = D // td
    kernel = functools.partial(_barlow_loss_kernel,
                               inv_batch=1.0 / float(batch_size))
    zb = jnp.dtype(z.dtype).itemsize
    working = 4 * B * td * zb + td * td * 4 + 128 * 4
    partials = pl.pallas_call(
        kernel,
        out_shape=jax.ShapeDtypeStruct((nd, 1, 128), jnp.float32),
        grid=(nd, nd),
        in_specs=[
            pl.BlockSpec((B, td), lambda i, j: (0, i)),   # view-0 rows of z
            pl.BlockSpec((B, td), lambda i, j: (1, j)),   # view-1 rows of z
        ],
        out_specs=pl.BlockSpec((1, 1, 128), lambda i, j: (i, 0, 0)),
        scratch_shapes=[pltpu.VMEM((1, 1), jnp.float32),
                        pltpu.VMEM((1, 1), jnp.float32)],
        compiler_params=pltpu.CompilerParams(
            # per-i partial outputs -> the i axis can shard across TCs on v7x;
            # j is the per-i reduction axis.
            dimension_semantics=("parallel", "arbitrary"),
            vmem_limit_bytes=_vmem_limit(working)),
        cost_estimate=pl.CostEstimate(
            flops=int(2 * D * D * B), transcendentals=0,
            bytes_accessed=int(B * D * zb + nd * B * D * zb + nd * 128 * 4)),
    )(z, z)
    on_diag = jnp.sum(partials[:, 0, 0])
    off_diag = jnp.sum(partials[:, 0, 1])
    return on_diag + lambd * off_diag


# --------------------------------------------------------------------------
# BarlowTwins model (parameters built deterministically in-script)
# --------------------------------------------------------------------------
class BarlowTwinsPallas:
    def __init__(self, *, feature_dim, projector, batch_size, lambd, img_shape, key):
        self.batch_size = batch_size
        self.lambd = lambd
        C, H, W = img_shape
        in_flat = C * H * W

        sizes = [feature_dim] + [int(s) for s in projector.split("-")]
        keys = jax.random.split(key, 1 + len(sizes) - 1)

        # Backbone stand-in: flatten + linear (no bias) to feature_dim (bf16 weights).
        self.w_backbone = (
            jax.random.normal(keys[0], (in_flat, feature_dim), jnp.float32)
            / jnp.sqrt(in_flat)
        ).astype(jnp.bfloat16)

        # Projector: [Linear(no bias) -> BN1d -> ReLU] * (L-1) -> Linear(no bias)
        self.proj_weights = []
        self.proj_bn = []  # (gamma, beta) for all but the last linear
        for i in range(len(sizes) - 1):
            w = (
                jax.random.normal(keys[1 + i], (sizes[i], sizes[i + 1]), jnp.float32)
                / jnp.sqrt(sizes[i])
            ).astype(jnp.bfloat16)
            self.proj_weights.append(w)
            if i < len(sizes) - 2:
                self.proj_bn.append(
                    (
                        jnp.ones((1, sizes[i + 1]), jnp.float32),
                        jnp.zeros((1, sizes[i + 1]), jnp.float32),
                    )
                )

    def forward(self, y1, y2):
        B = y1.shape[0]
        # Both views share every weight -> process them in one pass per layer.
        x = jnp.concatenate(
            [y1.reshape(B, -1), y2.reshape(B, -1)], axis=0
        ).astype(jnp.bfloat16)

        h = pallas_linear(x, self.w_backbone, out_dtype=jnp.bfloat16)

        n = len(self.proj_weights)
        for i in range(n - 1):
            gamma, beta = self.proj_bn[i]
            h = pallas_linear(h, self.proj_weights[i], gamma, beta,
                              epilogue="bn_relu", num_views=2,
                              out_dtype=jnp.bfloat16)

        # Final linear with the affine-free per-view BN fused into its epilogue;
        # bf16 output feeds the loss MXU at native rate (f32 accumulation there).
        z = pallas_linear(h, self.proj_weights[-1],
                          epilogue="bn", num_views=2, out_dtype=jnp.bfloat16)

        return pallas_barlow_loss(z, self.batch_size, self.lambd)


# --------------------------------------------------------------------------
# Pure-JAX reference (mirrors the kernel's bf16/f32 mixed precision, including
# the deliberate bf16-inputs / f32-accumulation correlation matmul).
# --------------------------------------------------------------------------
def reference_forward(model, y1, y2):
    def bn(x, gamma=None, beta=None):
        mean = jnp.mean(x, axis=0, keepdims=True)
        var = jnp.mean((x - mean) ** 2, axis=0, keepdims=True)
        xn = (x - mean) * lax.rsqrt(var + EPS)
        if gamma is not None:
            xn = xn * gamma + beta
        return xn

    def encode(y):
        x = y.reshape(y.shape[0], -1).astype(jnp.bfloat16)
        x = jnp.dot(x, model.w_backbone,
                    preferred_element_type=jnp.float32).astype(jnp.bfloat16)
        n = len(model.proj_weights)
        for i in range(n - 1):
            h = jnp.dot(x, model.proj_weights[i],
                        preferred_element_type=jnp.float32)
            g, b = model.proj_bn[i]
            h = jnp.maximum(bn(h, g, b), 0.0)
            x = h.astype(jnp.bfloat16)
        return jnp.dot(x, model.proj_weights[-1],
                       preferred_element_type=jnp.float32)

    z1, z2 = encode(y1), encode(y2)
    z1n = bn(z1).astype(jnp.bfloat16)
    z2n = bn(z2).astype(jnp.bfloat16)
    c = jnp.dot(z1n.T, z2n,
                preferred_element_type=jnp.float32) / model.batch_size
    on_diag = jnp.sum((jnp.diag(c) - 1.0) ** 2)
    off_diag = jnp.sum(c ** 2) - jnp.sum(jnp.diag(c) ** 2)
    return on_diag + model.lambd * off_diag


# --------------------------------------------------------------------------
if __name__ == "__main__":
    key = jax.random.PRNGKey(0)
    B, C, H, W = 8, 3, 16, 16
    k1, k2, kp = jax.random.split(key, 3)
    y1 = jax.random.normal(k1, (B, C, H, W), jnp.float32)
    y2 = jax.random.normal(k2, (B, C, H, W), jnp.float32)

    # Small stand-ins for the real config (2048 features, "8192-8192-8192"
    # projector) chosen so K-tiling (768 -> 2 k-steps), N-tiling (1024 -> 2
    # n-steps) and the off-diagonal loss tiles (D=1024, td=512 -> 2x2 grid)
    # are all exercised.
    model = BarlowTwinsPallas(
        feature_dim=512,
        projector="256-256-1024",
        batch_size=B,
        lambd=0.0051,
        img_shape=(C, H, W),
        key=kp,
    )

    loss = model.forward(y1, y2)
    jax.block_until_ready(loss)

    ref = reference_forward(model, y1, y2)
    jax.block_until_ready(ref)

    assert jnp.isfinite(loss), "loss is not finite"
    assert jnp.allclose(loss, ref, rtol=2e-2, atol=1e-2), (loss, ref)

    print("KERNEL_OK")
</pallas_src>

<mosaic_0001>
module attributes {stable_mosaic.version = 11 : i64} {
  func.func @_linear_kernel(%arg0: i32, %arg1: i32, %arg2: memref<16x384xbf16, #tpu.memory_space<vmem>>, %arg3: memref<384x512xbf16, #tpu.memory_space<vmem>>, %arg4: memref<16x512xbf16, #tpu.memory_space<vmem>>, %arg5: memref<16x512xf32, #tpu.memory_space<vmem>>) attributes {dimension_semantics = [#tpu.dimension_semantics<parallel>, #tpu.dimension_semantics<arbitrary>], iteration_bounds = array<i64: 1, 2>, scalar_prefetch = 0 : i64, scratch_operands = 1 : i64, tpu.core_type = #tpu.core_type<tc>, window_params = [{transform_indices = @transform_0, window_bounds = array<i64: 16, 384>}, {transform_indices = @transform_1, window_bounds = array<i64: 384, 512>}, {transform_indices = @transform_2, window_bounds = array<i64: 16, 512>}]} {
    %c0_i32 = arith.constant 0 : i32
    %0 = arith.cmpi eq, %arg1, %c0_i32 : i32
    %1 = arith.extui %0 : i1 to i32
    %c0_i32_0 = arith.constant 0 : i32
    %2 = arith.cmpi ne, %1, %c0_i32_0 : i32
    scf.if %2 {
      %cst_9 = arith.constant 0.000000e+00 : f32
      %12 = vector.broadcast %cst_9 : f32 to vector<16x512xf32>
      %c0_10 = arith.constant 0 : index
      %c0_11 = arith.constant 0 : index
      %13 = vector.load %arg5[%c0_10, %c0_11] : memref<16x512xf32, #tpu.memory_space<vmem>>, vector<16x512xf32>
      tpu.vector_store %arg5[%c0_10, %c0_11], %12 {strides = array<i32>} : memref<16x512xf32, #tpu.memory_space<vmem>>, vector<16x512xf32>,
    } else {
    }
    %c0 = arith.constant 0 : index
    %c0_1 = arith.constant 0 : index
    %3 = vector.load %arg5[%c0, %c0_1] : memref<16x512xf32, #tpu.memory_space<vmem>>, vector<16x512xf32>
    %c0_2 = arith.constant 0 : index
    %c0_3 = arith.constant 0 : index
    %4 = vector.load %arg2[%c0_2, %c0_3] : memref<16x384xbf16, #tpu.memory_space<vmem>>, vector<16x384xbf16>
    %c0_4 = arith.constant 0 : index
    %c0_5 = arith.constant 0 : index
    %5 = vector.load %arg3[%c0_4, %c0_5] : memref<384x512xbf16, #tpu.memory_space<vmem>>, vector<384x512xbf16>
    %cst = arith.constant dense<0.000000e+00> : vector<16x512xf32>
    %6 = tpu.matmul %4, %5, %cst {dimension_numbers = #tpu.dot_dimension_numbers<[1], [0], [0], [1], [0, 0, 1, 1], [], []>} : vector<16x384xbf16>, vector<384x512xbf16>, vector<16x512xf32> -> vector<16x512xf32>
    %7 = arith.addf %3, %6 : vector<16x512xf32>
    %c0_6 = arith.constant 0 : index
    %c0_7 = arith.constant 0 : index
    %8 = vector.load %arg5[%c0_6, %c0_7] : memref<16x512xf32, #tpu.memory_space<vmem>>, vector<16x512xf32>
    tpu.vector_store %arg5[%c0_6, %c0_7], %7 {strides = array<i32>} : memref<16x512xf32, #tpu.memory_space<vmem>>, vector<16x512xf32>,
    %c1_i32 = arith.constant 1 : i32
    %9 = arith.cmpi eq, %arg1, %c1_i32 : i32
    %10 = arith.extui %9 : i1 to i32
    %c0_i32_8 = arith.constant 0 : i32
    %11 = arith.cmpi ne, %10, %c0_i32_8 : i32
    scf.if %11 {
      %c0_9 = arith.constant 0 : index
      %c0_10 = arith.constant 0 : index
      %12 = vector.load %arg5[%c0_9, %c0_10] : memref<16x512xf32, #tpu.memory_space<vmem>>, vector<16x512xf32>
      %13 = arith.truncf %12 : vector<16x512xf32> to vector<16x512xbf16>
      %c0_11 = arith.constant 0 : index
      %c0_12 = arith.constant 0 : index
      %14 = vector.load %arg4[%c0_11, %c0_12] : memref<16x512xbf16, #tpu.memory_space<vmem>>, vector<16x512xbf16>
      tpu.vector_store %arg4[%c0_11, %c0_12], %13 {strides = array<i32>} : memref<16x512xbf16, #tpu.memory_space<vmem>>, vector<16x512xbf16>,
    } else {
    }
    return
  }
  func.func @transform_0(%arg0: i32, %arg1: i32) -> (i32, i32) {
    %c0_i32 = arith.constant 0 : i32
    %c0_i32_0 = arith.constant 0 : i32
    return %c0_i32, %arg1 : i32, i32
  }
  func.func @transform_1(%arg0: i32, %arg1: i32) -> (i32, i32) {
    %c0_i32 = arith.constant 0 : i32
    return %arg1, %arg0 : i32, i32
  }
  func.func @transform_2(%arg0: i32, %arg1: i32) -> (i32, i32) {
    %c0_i32 = arith.constant 0 : i32
    %c0_i32_0 = arith.constant 0 : i32
    return %c0_i32, %arg0 : i32, i32
  }
}

</mosaic_0001>

<bundles_post_ra>
// kernel: tpu_custom_call.1
= control target key start
LH: loop header
LB: loop body
LE: loop exit
PB: predicated region body
PF: predicated region fallthrough
CT: control target
= control target key end

     0   :  { %7 = vsyncpa [#allocation4], 0  ;;  %s1991_s0 = inlined_call_operand.hbm [shape: bf16[16,768], index: 0, kind: input, shape index: {}]   ;;  %s1992_s1 = inlined_call_operand.hbm [shape: bf16[768,512], index: 1, kind: input, shape index: {}]   ;;  %s1993_s2 = inlined_call_operand.hbm [shape: bf16[16,512], index: 2, kind: output, shape index: {}]  }
   0x1   :  { %9 = vsyncpa [#allocation4 + $0x1], 0 }
   0x2   :  { %10 = vsyncpa [#allocation7], 0 }
   0x3   :  { %12 = vsyncpa [#allocation7 + $0x1], 0 }
   0x4   :  { %13 = vsyncpa [#allocation5], 0  ;;  %s1693_s9 = smov 0   ;;  %s1695_s10 = smov 0  }
   0x5   :  { %s1697_s11 = smov 0   ;;  %s1699_s12 = smov 0  }
   0x6   :  { %s1701_s13 = smov 0   ;;  %s1703_s14 = smov 0  }
   0x7 LB: > { %s1160_s15 = sadd.s32 4294967295, %s1664_s14   ;;  %s28_s16 = sadd.s32 1, %s1660_s13  ;;  %s1664_s14 = sphi %s1703_s14, %s19_s14   ;;  %s1660_s13 = sphi %s1701_s13, %s2005_s13   ;;  %s1656_s12 = sphi %s1699_s12, %s2004_s12   ;;  %s1652_s11 = sphi %s1697_s11, %s2003_s11   ;;  %s1648_s10 = sphi %s1695_s10, %s2002_s10   ;;  %s1644_s9 = sphi %s1693_s9, %s2001_s9  }
   0x8   : > { %p29_p0 = scmp.ge.s32.totalorder %s28_s16, 2  ;;  %s38_s17 = sadd.s32 1, %s1652_s11 }
   0x9   : > { %p45_p1 = scmp.ne.s32.totalorder %s1652_s11, %s1648_s10  ;;  %p46_p2 = scmp.eq.s32.totalorder %s1664_s14, 0 }
   0xa   : > { %s2007_s16 = smov (%p29_p0, %s28_s16), 0  ;;  %p51_p4 = scmp.ne.s32.totalorder %s1648_s10, %s1644_s9 }
   0xb   : > { %p47_p3 = por %p46_p2, %p45_p1  ;;  %s35_s18 = ssub.s32 %s1660_s13, %s2007_s16 }
   0xc   : > { %p52_p5 = scmp.eq.s32.totalorder %s1160_s15, 0  ;;  %p36_p6 = scmp.eq.s32.totalorder %s35_s18, 0 }
   0xd   : > { %p1311_p8 = scmp.lt.s32.totalorder %s1664_s14, 2  ;;  %s1743_s21 = sand.u32 1, %s1652_s11  }
   0xe   : > { %p1734_p7 = por %p52_p5, %p51_p4  ;;  %s1276_s22 = smul.u32 192, %s1660_s13 }
   0xf   : > { %s1740_s20 = scalar_select %p36_p6, %s1652_s11, %s38_s17  }
  0x10   : > { %s1995_s19 = scalar_select %p1734_p7, 1, 0 }
  0x11   : > { %s1292_s23 = smul.u32 24, %s1743_s21  ;;  %s1750_s26 = scalar_lea.hbm %s1991_s0, %s1276_s22 }
  0x12   : > { %p1752_p9 = pnand %p1311_p8, %p47_p3  ;;  %s130_s30 = scalar_lea.sflag [#allocation4], %s1743_s21 }
  0x13   : > { %s133_s28 = scalar_lea.vmem [#allocation3], %s1292_s23  ;;  %s1520_s3 = scalar_lea.hbm %s1750_s26, 384 }
  0x14   : > { %s140_s29 = sshll.u32 %s133_s28, 4  ;;  %p1521_p11 = scmp.ne.s32.totalorder %s1750_s26, %s1520_s3  ;;  %s1756_s29 = int_to_ptr.vmem [resolvable:$true] %s140_s29 }
  0x15   : > { %p1522_p12 = pneg %p1752_p9  ;;  %s1525_s6 = scalar_lea.hbm %s1991_s0, 768 }
  0x16   : > { %p1526_p1 = scmp.lt.u32.totalorder %s1750_s26, %s1991_s0  ;;  %p1527_p2 = scmp.lt.u32.totalorder %s1525_s6, %s1520_s3 }
  0x17   : > { %p1523_p13 = pnand %p1522_p12, %p1521_p11  ;;  %p1529_p4 = scmp.lt.u32.totalorder %s1520_s3, %s1750_s26 }
  0x18   : > { %p1528_p3 = por %p1527_p2, %p1526_p1 }
  0x19   : > { %p1524_p0 = pneg %p1523_p13 }
  0x1a   : > { %p1530_p5 = por %p1529_p4, %p1528_p3 }
  0x1c   : > { %p1531_p6 = pnand %p1530_p5, %p1524_p0 }
  0x1e   : > { %1534 = shalt.err (!%p1531_p6)
}
  0x1f   : > { %s1535_s9 = scalar_lea.vmem %s1756_s29, 384  ;;  %s1666_s17 = smov [#allocation3]  }
  0x20   : > { %p1536_p8 = scmp.ne.s32.totalorder %s1756_s29, %s1535_s9  ;;  %s1540_s18 = sshll.u32 %s1666_s17, 4  ;;  %s1541_s18 = int_to_ptr.vmem [resolvable:$false] %s1540_s18 }
  0x21   : > { %s1542_s22 = scalar_lea.vmem %s1541_s18, 768  ;;  %p1543_p10 = scmp.lt.s32.totalorder %s1756_s29, %s1541_s18 }
  0x22   : > { %p1538_p11 = pnand %p1536_p8, %p1522_p12  ;;  %p1544_p1 = scmp.lt.s32.totalorder %s1542_s22, %s1535_s9 }
  0x24   : > { %p1539_p13 = pneg %p1538_p11  ;;  %p1545_p2 = por %p1544_p1, %p1543_p10 }
  0x26   : > { %p1546_p3 = pnand %p1545_p2, %p1539_p13 }
  0x28   : > { %1549 = shalt.err (!%p1546_p3)
}
  0x29   : > { %s1667_s23 = smov 384   ;;  %s1668_s24 = smov 192  }
  0x2a   : > { %s1669_s25 = smov 12   ;;  %p172_p0 = scmp.lt.s32.totalorder %s1664_s14, 3 }
  0x2b   : > { %1307 = dma.hbm_to_vmem [thread:$0]  (!%p1752_p9), %s1750_s26, 384, %s1756_s29, %s130_s30, %s1667_s23, %s1668_s24, %s1669_s25  }
  0x2c   : > { %s1293_s28 = smul.u32 768, %s1743_s21  ;;  %p1997_p10 = scmp.ge.s32.totalorder %s1664_s14, 1 }
  0x2d   : > { %s1283_s4 = smul.u32 12288, %s1660_s13  ;;  %s151_s26 = scalar_lea.sflag [#allocation7], %s1743_s21 }
  0x2e   : > { %p1791_p4 = pnand %p1997_p10, %p172_p0  ;;  %s154_s8 = scalar_lea.vmem [#allocation6], %s1293_s28 }
  0x2f   : > { %s1799_s7 = scalar_lea.hbm %s1992_s1, %s1283_s4  ;;  %s164_s9 = sshll.u32 %s154_s8, 4  ;;  %s1801_s9 = int_to_ptr.vmem [resolvable:$true] %s164_s9 }
  0x30   : > { %s1550_s29 = scalar_lea.hbm %s1799_s7, 12288  ;;  %s1555_s18 = scalar_lea.hbm %s1992_s1, 24576 }
  0x31   : > { %p1551_p5 = scmp.ne.s32.totalorder %s1799_s7, %s1550_s29  ;;  %p1556_p11 = scmp.lt.u32.totalorder %s1799_s7, %s1992_s1 }
  0x32   : > { %p1557_p13 = scmp.lt.u32.totalorder %s1555_s18, %s1550_s29  ;;  %p1559_p2 = scmp.lt.u32.totalorder %s1550_s29, %s1799_s7 }
  0x33   : > { %p1553_p6 = pnand %p1551_p5, %p1522_p12 }
  0x34   : > { %p1558_p1 = por %p1557_p13, %p1556_p11 }
  0x35   : > { %p1554_p8 = pneg %p1553_p6 }
  0x36   : > { %p1560_p3 = por %p1559_p2, %p1558_p1 }
  0x38   : > { %p1561_p0 = pnand %p1560_p3, %p1554_p8 }
  0x3a   : > { %1564 = shalt.err (!%p1561_p0)
}
  0x3b   : > { %s1565_s24 = scalar_lea.vmem %s1801_s9, 12288  ;;  %s1670_s25 = smov [#allocation6]  }
  0x3c   : > { %p1566_p10 = scmp.ne.s32.totalorder %s1801_s9, %s1565_s24  ;;  %s1570_s28 = sshll.u32 %s1670_s25, 4  ;;  %s1571_s28 = int_to_ptr.vmem [resolvable:$false] %s1570_s28 }
  0x3d   : > { %s1572_s4 = scalar_lea.vmem %s1571_s28, 24576  ;;  %p1573_p7 = scmp.lt.s32.totalorder %s1801_s9, %s1571_s28 }
  0x3e   : > { %p1568_p5 = pnand %p1566_p10, %p1522_p12  ;;  %p1574_p11 = scmp.lt.s32.totalorder %s1572_s4, %s1565_s24 }
  0x40   : > { %p1569_p6 = pneg %p1568_p5  ;;  %p1575_p13 = por %p1574_p11, %p1573_p7 }
  0x42   : > { %p1576_p1 = pnand %p1575_p13, %p1569_p6 }
  0x44   : > { %1579 = shalt.err (!%p1576_p1)
}
  0x45   : > { %s1671_s5 = smov 256   ;;  %s1672_s6 = smov 16  }
  0x46   : > { %1310 = dma.hbm_to_vmem [thread:$0]  (!%p1752_p9), %s1799_s7, 12288, %s1801_s9, %s151_s26, %s1671_s5, %s1671_s5, %s1672_s6  }
  0x47   : > { %176 = sbr.rel (%p1791_p4) target bundleno = 443 (0x1bb), region = 28  ;;  %s178_s8 = sand.u32 (!%p1791_p4), 1, %s1648_s10  }
  0x48   : > { %s1294_s29 = smul.u32 (!%p1791_p4), 24, %s178_s8  ;;  %s179_s30 = scalar_lea.sflag (!%p1791_p4), [#allocation4], %s178_s8 }
  0x49   : > { %p1999_p7 = scmp.ne.s32.totalorder (!%p1791_p4), %s1995_s19, 0 }
  0x4a   : > { %s1832_s17 = scalar_lea.vmem (!%p1791_p4), [#allocation3], %s1294_s29 }
  0x4e   : > { %1631 = dma.done.wait (%p1999_p7), %s179_s30, 384  }
  0x4f   : > { %1633 = vsyncadd (%p1999_p7), %s179_s30, 4294966912  ;;  %s1295_s18 = smul.u32 768, %s178_s8  ;;  %s188_s27 = scalar_lea.sflag [#allocation7], %s178_s8 }
  0x51   : > { %s1838_s21 = scalar_lea.vmem [#allocation6], %s1295_s18 }
  0x52   : > { %1635 = dma.done.wait (%p1999_p7), %s188_s27, 12288  }
  0x53   : > { %1637 = vsyncadd (%p1999_p7), %s188_s27, 4294955008  ;;  %p1167_p9 = scmp.ne.s32.totalorder %s1656_s12, 0 }
  0x54   : > { %v1673_v0 = vmov (!%p1167_p9), 0.0  }
  0x55   : > { %220 = sbr.rel (%p1167_p9) target bundleno = 92 (0x5c), region = 40  ;;  %221 = vst [vmem:[#allocation2] sm:$0xff] (!%p1167_p9), %v1673_v0  ;;  %222 = vst [vmem:[#allocation2 + $0x8] sm:$0xff] (!%p1167_p9), %v1673_v0 }
  0x56   : > { %223 = vst [vmem:[#allocation2 + $0x10] sm:$0xff] (!%p1167_p9), %v1673_v0  ;;  %224 = vst [vmem:[#allocation2 + $0x18] sm:$0xff] (!%p1167_p9), %v1673_v0 }
  0x57   : > { %225 = vst [vmem:[#allocation2 + $0x20] sm:$0xff] (!%p1167_p9), %v1673_v0  ;;  %226 = vst [vmem:[#allocation2 + $0x28] sm:$0xff] (!%p1167_p9), %v1673_v0 }
  0x58   : > { %227 = vst [vmem:[#allocation2 + $0x30] sm:$0xff] (!%p1167_p9), %v1673_v0  ;;  %228 = vst [vmem:[#allocation2 + $0x38] sm:$0xff] (!%p1167_p9), %v1673_v0 }
  0x5c PF: > { %v1372_v1 = vld [vmem:[%s1838_s21 + $0x4] ss:$16 sps:$4 sm:$0xff]   ;;  %v1374_v2 = vld [vmem:[%s1838_s21 + $0xc] ss:$16 sps:$4 sm:$0xff]   ;;  %v1376_v3 = vld [vmem:[%s1838_s21] ss:$16 sps:$4 sm:$0xff]  }
  0x5d   : > { %833 = vmatprep.subr.bf16.mxu0 %v1372_v1  ;;  %v1377_v4 = vld [vmem:[%s1838_s21 + $0x8] ss:$16 sps:$4 sm:$0xff]   ;;  %919 = vmatprep.subr.bf16.mxu1 %v1374_v2  ;;  %v1378_v5 = vld [vmem:[%s1838_s21 + $0x24] ss:$16 sps:$4 sm:$0xff]   ;;  %v1380_v6 = vld [vmem:[%s1838_s21 + $0x2c] ss:$16 sps:$4 sm:$0xff]  }
  0x5e   : > { %834 = vmatpush1.bf16.msra.mxu0 %v1376_v3  ;;  %920 = vmatpush1.bf16.msra.mxu1 %v1377_v4  ;;  %v1382_v7 = vld [vmem:[%s1838_s21 + $0x20] ss:$16 sps:$4 sm:$0xff]   ;;  %v1383_v8 = vld [vmem:[%s1838_s21 + $0x28] ss:$16 sps:$4 sm:$0xff]   ;;  %v1384_v9 = vld [vmem:[%s1838_s21 + $0x44] ss:$16 sps:$4 sm:$0xff]  }
  0x5f   : > { %835 = vmatprep.subr.bf16.mxu0 %v1378_v5  ;;  %921 = vmatprep.subr.bf16.mxu1 %v1380_v6  ;;  %v1386_v10 = vld [vmem:[%s1838_s21 + $0x4c] ss:$16 sps:$4 sm:$0xff]   ;;  %v1388_v11 = vld [vmem:[%s1838_s21 + $0x40] ss:$16 sps:$4 sm:$0xff]   ;;  %v1389_v12 = vld [vmem:[%s1838_s21 + $0x48] ss:$16 sps:$4 sm:$0xff]  }
  0x60   : > { %v1390_v13 = vld [vmem:[%s1838_s21 + $0x64] ss:$16 sps:$4 sm:$0xff]   ;;  %v1392_v14 = vld [vmem:[%s1838_s21 + $0x6c] ss:$16 sps:$4 sm:$0xff]   ;;  %v1394_v15 = vld [vmem:[%s1838_s21 + $0x60] ss:$16 sps:$4 sm:$0xff]  }
  0x61   : > { %v1395_v16 = vld [vmem:[%s1838_s21 + $0x68] ss:$16 sps:$4 sm:$0xff]   ;;  %v1396_v17 = vld [vmem:[%s1838_s21 + $0x84] ss:$16 sps:$4 sm:$0xff]   ;;  %v1398_v18 = vld [vmem:[%s1838_s21 + $0x8c] ss:$16 sps:$4 sm:$0xff]  }
  0x62   : > { %836 = vmatpush1.bf16.msra.mxu0 %v1382_v7  ;;  %922 = vmatpush1.bf16.msra.mxu1 %v1383_v8  ;;  %v1400_v19 = vld [vmem:[%s1838_s21 + $0x80] ss:$16 sps:$4 sm:$0xff]   ;;  %v1401_v20 = vld [vmem:[%s1838_s21 + $0x88] ss:$16 sps:$4 sm:$0xff]   ;;  %v1402_v21 = vld [vmem:[%s1838_s21 + $0xa4] ss:$16 sps:$4 sm:$0xff]  }
  0x63   : > { %837 = vmatprep.subr.bf16.mxu0 %v1384_v9  ;;  %923 = vmatprep.subr.bf16.mxu1 %v1386_v10  ;;  %v1404_v22 = vld [vmem:[%s1838_s21 + $0xac] ss:$16 sps:$4 sm:$0xff]   ;;  %v1406_v23 = vld [vmem:[%s1838_s21 + $0xa0] ss:$16 sps:$4 sm:$0xff]   ;;  %v1407_v24 = vld [vmem:[%s1838_s21 + $0xa8] ss:$16 sps:$4 sm:$0xff]  }
  0x64   : > { %v1408_v25 = vld [vmem:[%s1838_s21 + $0xc4] ss:$16 sps:$4 sm:$0xff]   ;;  %v1410_v26 = vld [vmem:[%s1838_s21 + $0xcc] ss:$16 sps:$4 sm:$0xff]   ;;  %v1412_v27 = vld [vmem:[%s1838_s21 + $0xc0] ss:$16 sps:$4 sm:$0xff]  }
  0x65   : > { %v1413_v28 = vld [vmem:[%s1838_s21 + $0xc8] ss:$16 sps:$4 sm:$0xff]   ;;  %v1414_v29 = vld [vmem:[%s1838_s21 + $0xe4] ss:$16 sps:$4 sm:$0xff]   ;;  %v1416_v30 = vld [vmem:[%s1838_s21 + $0xec] ss:$16 sps:$4 sm:$0xff]  }
  0x66   : > { %838 = vmatpush1.bf16.msra.mxu0 %v1388_v11  ;;  %924 = vmatpush1.bf16.msra.mxu1 %v1389_v12  ;;  %v1418_v31 = vld [vmem:[%s1838_s21 + $0xe0] ss:$16 sps:$4 sm:$0xff]   ;;  %v1419_v32 = vld [vmem:[%s1838_s21 + $0xe8] ss:$16 sps:$4 sm:$0xff]   ;;  %v1420_v33 = vld [vmem:[%s1838_s21 + $0x104] ss:$16 sps:$4 sm:$0xff]  }
  0x67   : > { %839 = vmatprep.subr.bf16.mxu0 %v1390_v13  ;;  %925 = vmatprep.subr.bf16.mxu1 %v1392_v14  ;;  %v1422_v34 = vld [vmem:[%s1838_s21 + $0x10c] ss:$16 sps:$4 sm:$0xff]   ;;  %v1424_v35 = vld [vmem:[%s1838_s21 + $0x100] ss:$16 sps:$4 sm:$0xff]   ;;  %v1425_v36 = vld [vmem:[%s1838_s21 + $0x108] ss:$16 sps:$4 sm:$0xff]  }
  0x68   : > { %v1426_v37 = vld [vmem:[%s1838_s21 + $0x124] ss:$16 sps:$4 sm:$0xff]   ;;  %v1428_v38 = vld [vmem:[%s1838_s21 + $0x12c] ss:$16 sps:$4 sm:$0xff]   ;;  %v1430_v39 = vld [vmem:[%s1838_s21 + $0x120] ss:$16 sps:$4 sm:$0xff]  }
  0x69   : > { %v1431_v40 = vld [vmem:[%s1838_s21 + $0x128] ss:$16 sps:$4 sm:$0xff]   ;;  %v1432_v41 = vld [vmem:[%s1838_s21 + $0x144] ss:$16 sps:$4 sm:$0xff]   ;;  %v1434_v42 = vld [vmem:[%s1838_s21 + $0x14c] ss:$16 sps:$4 sm:$0xff]  }
  0x6a   : > { %840 = vmatpush1.bf16.msra.mxu0 %v1394_v15  ;;  %926 = vmatpush1.bf16.msra.mxu1 %v1395_v16  ;;  %v1436_v43 = vld [vmem:[%s1838_s21 + $0x140] ss:$16 sps:$4 sm:$0xff]   ;;  %v1437_v44 = vld [vmem:[%s1838_s21 + $0x148] ss:$16 sps:$4 sm:$0xff]   ;;  %v1438_v45 = vld [vmem:[%s1838_s21 + $0x164] ss:$16 sps:$4 sm:$0xff]  }
  0x6b   : > { %841 = vmatprep.subr.bf16.mxu0 %v1396_v17  ;;  %927 = vmatprep.subr.bf16.mxu1 %v1398_v18  ;;  %v1440_v46 = vld [vmem:[%s1838_s21 + $0x16c] ss:$16 sps:$4 sm:$0xff]   ;;  %v1442_v47 = vld [vmem:[%s1838_s21 + $0x160] ss:$16 sps:$4 sm:$0xff]   ;;  %v1443_v48 = vld [vmem:[%s1838_s21 + $0x168] ss:$16 sps:$4 sm:$0xff]  }
  0x6c   : > { %v1470_v49 = vld [vmem:[%s1832_s17 + $0x4] ss:$12 sps:$4 sm:$0xff]   ;;  %v1468_v4 = vld [vmem:[%s1832_s17] ss:$12 sps:$4 sm:$0xff]   ;;  %v1674_v13 = vmov 0   ;;  %p1267_p12 = scmp.ne.s32.totalorder %s1656_s12, 1 }
  0x6d   : > { %v1444_v50 = vld [vmem:[%s1838_s21 + $0x184] ss:$16 sps:$4 sm:$0xff]   ;;  %v1446_v51 = vld [vmem:[%s1838_s21 + $0x18c] ss:$16 sps:$4 sm:$0xff]   ;;  %865 = vmatprep.mubr.bf16.mxu0 %v1470_v49  ;;  %951 = vmatprep.mubr.bf16.mxu1 %v1470_v49  ;;  %v1448_v52 = vld [vmem:[%s1838_s21 + $0x180] ss:$16 sps:$4 sm:$0xff]  }
  0x6e   : > { %842 = vmatpush1.bf16.msra.mxu0 %v1400_v19  ;;  %928 = vmatpush1.bf16.msra.mxu1 %v1401_v20  ;;  %v1449_v53 = vld [vmem:[%s1838_s21 + $0x188] ss:$16 sps:$4 sm:$0xff]   ;;  %v1450_v54 = vld [vmem:[%s1838_s21 + $0x1a4] ss:$16 sps:$4 sm:$0xff]   ;;  %v1452_v55 = vld [vmem:[%s1838_s21 + $0x1ac] ss:$16 sps:$4 sm:$0xff]  }
  0x6f   : > { %843 = vmatprep.subr.bf16.mxu0 %v1402_v21  ;;  %929 = vmatprep.subr.bf16.mxu1 %v1404_v22  ;;  %v1454_v56 = vld [vmem:[%s1838_s21 + $0x1a0] ss:$16 sps:$4 sm:$0xff]   ;;  %v1455_v57 = vld [vmem:[%s1838_s21 + $0x1a8] ss:$16 sps:$4 sm:$0xff]   ;;  %v1456_v58 = vld [vmem:[%s1838_s21 + $0x1c4] ss:$16 sps:$4 sm:$0xff]  }
  0x70   : > { %v1458_v59 = vld [vmem:[%s1838_s21 + $0x1cc] ss:$16 sps:$4 sm:$0xff]   ;;  %v1460_v60 = vld [vmem:[%s1838_s21 + $0x1c0] ss:$16 sps:$4 sm:$0xff]   ;;  %v1461_v61 = vld [vmem:[%s1838_s21 + $0x1c8] ss:$16 sps:$4 sm:$0xff]  }
  0x71   : > { %v1462_v62 = vld [vmem:[%s1838_s21 + $0x1e4] ss:$16 sps:$4 sm:$0xff]   ;;  %v1464_v63 = vld [vmem:[%s1838_s21 + $0x1ec] ss:$16 sps:$4 sm:$0xff]   ;;  %v1466_v0 = vld [vmem:[%s1838_s21 + $0x1e0] ss:$16 sps:$4 sm:$0xff]  }
  0x72   : > { %844 = vmatpush1.bf16.msra.mxu0 %v1406_v23  ;;  %930 = vmatpush1.bf16.msra.mxu1 %v1407_v24  ;;  %v1467_v1 = vld [vmem:[%s1838_s21 + $0x1e8] ss:$16 sps:$4 sm:$0xff]   ;;  %v1473_v2 = vld [vmem:[%s1838_s21 + $0x204] ss:$16 sps:$4 sm:$0xff]   ;;  %v1476_v3 = vld [vmem:[%s1838_s21 + $0x20c] ss:$16 sps:$4 sm:$0xff]  }
  0x73   : > { %845 = vmatprep.subr.bf16.mxu0 %v1408_v25  ;;  %931 = vmatprep.subr.bf16.mxu1 %v1410_v26  ;;  %v1471_v5 = vld [vmem:[%s1838_s21 + $0x200] ss:$16 sps:$4 sm:$0xff]   ;;  %v1474_v6 = vld [vmem:[%s1838_s21 + $0x208] ss:$16 sps:$4 sm:$0xff]   ;;  %v1479_v7 = vld [vmem:[%s1838_s21 + $0x224] ss:$16 sps:$4 sm:$0xff]  }
  0x74   : > { %v1482_v8 = vld [vmem:[%s1838_s21 + $0x22c] ss:$16 sps:$4 sm:$0xff]   ;;  %v1477_v9 = vld [vmem:[%s1838_s21 + $0x220] ss:$16 sps:$4 sm:$0xff]   ;;  %v1480_v10 = vld [vmem:[%s1838_s21 + $0x228] ss:$16 sps:$4 sm:$0xff]  }
  0x75   : > { %v1485_v11 = vld [vmem:[%s1838_s21 + $0x244] ss:$16 sps:$4 sm:$0xff]   ;;  %v1488_v12 = vld [vmem:[%s1838_s21 + $0x24c] ss:$16 sps:$4 sm:$0xff]   ;;  %v1483_v14 = vld [vmem:[%s1838_s21 + $0x240] ss:$16 sps:$4 sm:$0xff]  }
  0x76   : > { %846 = vmatpush1.bf16.msra.mxu0 %v1412_v27  ;;  %932 = vmatpush1.bf16.msra.mxu1 %v1413_v28  ;;  %v1486_v15 = vld [vmem:[%s1838_s21 + $0x248] ss:$16 sps:$4 sm:$0xff]   ;;  %v1491_v16 = vld [vmem:[%s1838_s21 + $0x264] ss:$16 sps:$4 sm:$0xff]   ;;  %v1494_v17 = vld [vmem:[%s1838_s21 + $0x26c] ss:$16 sps:$4 sm:$0xff]  }
  0x77   : > { %847 = vmatprep.subr.bf16.mxu0 %v1414_v29  ;;  %933 = vmatprep.subr.bf16.mxu1 %v1416_v30  ;;  %v1489_v18 = vld [vmem:[%s1838_s21 + $0x260] ss:$16 sps:$4 sm:$0xff]   ;;  %v1492_v19 = vld [vmem:[%s1838_s21 + $0x268] ss:$16 sps:$4 sm:$0xff]   ;;  %v1497_v20 = vld [vmem:[%s1838_s21 + $0x284] ss:$16 sps:$4 sm:$0xff]  }
  0x78   : > { %v1500_v21 = vld [vmem:[%s1838_s21 + $0x28c] ss:$16 sps:$4 sm:$0xff]   ;;  %v1495_v22 = vld [vmem:[%s1838_s21 + $0x280] ss:$16 sps:$4 sm:$0xff]   ;;  %v1498_v23 = vld [vmem:[%s1838_s21 + $0x288] ss:$16 sps:$4 sm:$0xff]  }
  0x79   : > { %v1503_v24 = vld [vmem:[%s1838_s21 + $0x2a4] ss:$16 sps:$4 sm:$0xff]   ;;  %v1506_v25 = vld [vmem:[%s1838_s21 + $0x2ac] ss:$16 sps:$4 sm:$0xff]   ;;  %v1501_v26 = vld [vmem:[%s1838_s21 + $0x2a0] ss:$16 sps:$4 sm:$0xff]  }
  0x7a   : > { %848 = vmatpush1.bf16.msra.mxu0 %v1418_v31  ;;  %934 = vmatpush1.bf16.msra.mxu1 %v1419_v32  ;;  %v1504_v27 = vld [vmem:[%s1838_s21 + $0x2a8] ss:$16 sps:$4 sm:$0xff]   ;;  %v1509_v28 = vld [vmem:[%s1838_s21 + $0x2c4] ss:$16 sps:$4 sm:$0xff]   ;;  %v1512_v29 = vld [vmem:[%s1838_s21 + $0x2cc] ss:$16 sps:$4 sm:$0xff]  }
  0x7b   : > { %849 = vmatprep.subr.bf16.mxu0 %v1420_v33  ;;  %935 = vmatprep.subr.bf16.mxu1 %v1422_v34  ;;  %v1507_v30 = vld [vmem:[%s1838_s21 + $0x2c0] ss:$16 sps:$4 sm:$0xff]   ;;  %v1510_v31 = vld [vmem:[%s1838_s21 + $0x2c8] ss:$16 sps:$4 sm:$0xff]   ;;  %v1515_v32 = vld [vmem:[%s1838_s21 + $0x2e4] ss:$16 sps:$4 sm:$0xff]  }
  0x7c   : > { %v1518_v33 = vld [vmem:[%s1838_s21 + $0x2ec] ss:$16 sps:$4 sm:$0xff]   ;;  %v1513_v34 = vld [vmem:[%s1838_s21 + $0x2e0] ss:$16 sps:$4 sm:$0xff]  }
  0x7d   : > { %v234_v49 = vld [vmem:[#allocation2 + $0x28] sm:$0xff] }
  0x7e   : > { %850 = vmatpush1.bf16.msra.mxu0 %v1424_v35  ;;  %936 = vmatpush1.bf16.msra.mxu1 %v1425_v36  ;;  %v1516_v35 = vld [vmem:[%s1838_s21 + $0x2e8] ss:$16 sps:$4 sm:$0xff]  }
  0x7f   : > { %851 = vmatprep.subr.bf16.mxu0 %v1426_v37  ;;  %937 = vmatprep.subr.bf16.mxu1 %v1428_v38  ;;  %v1519_v36 = vld [vmem:[%s1832_s17 + $0x8] ss:$12 sps:$4 sm:$0xff]  }
  0x80   : > { %v229_v37 = vld [vmem:[#allocation2] sm:$0xff]  ;;  %v231_v38 = vld [vmem:[#allocation2 + $0x10] sm:$0xff] }
  0x82   : > { %852 = vmatpush1.bf16.msra.mxu0 %v1430_v39  ;;  %938 = vmatpush1.bf16.msra.mxu1 %v1431_v40  ;;  %v230_v39 = vld [vmem:[#allocation2 + $0x8] sm:$0xff]  ;;  %v232_v40 = vld [vmem:[#allocation2 + $0x18] sm:$0xff] }
  0x83   : > { %853 = vmatprep.subr.bf16.mxu0 %v1432_v41  ;;  %939 = vmatprep.subr.bf16.mxu1 %v1434_v42 }
  0x86   : > { %854 = vmatpush1.bf16.msra.mxu0 %v1436_v43  ;;  %940 = vmatpush1.bf16.msra.mxu1 %v1437_v44  ;;  %v233_v43 = vld [vmem:[#allocation2 + $0x20] sm:$0xff]  ;;  %v235_v44 = vld [vmem:[#allocation2 + $0x30] sm:$0xff] }
  0x87   : > { %855 = vmatprep.subr.bf16.mxu0 %v1438_v45  ;;  %941 = vmatprep.subr.bf16.mxu1 %v1440_v46 }
  0x8a   : > { %856 = vmatpush1.bf16.msra.mxu0 %v1442_v47  ;;  %942 = vmatpush1.bf16.msra.mxu1 %v1443_v48 }
  0x8b   : > { %857 = vmatprep.subr.bf16.mxu0 %v1444_v50  ;;  %943 = vmatprep.subr.bf16.mxu1 %v1446_v51  ;;  %v236_v50 = vld [vmem:[#allocation2 + $0x38] sm:$0xff] }
  0x8e   : > { %858 = vmatpush1.bf16.msra.mxu0 %v1448_v52  ;;  %944 = vmatpush1.bf16.msra.mxu1 %v1449_v53 }
  0x8f   : > { %859 = vmatprep.subr.bf16.mxu0 %v1450_v54  ;;  %945 = vmatprep.subr.bf16.mxu1 %v1452_v55 }
  0x92   : > { %860 = vmatpush1.bf16.msra.mxu0 %v1454_v56  ;;  %946 = vmatpush1.bf16.msra.mxu1 %v1455_v57 }
  0x93   : > { %861 = vmatprep.subr.bf16.mxu0 %v1456_v58  ;;  %947 = vmatprep.subr.bf16.mxu1 %v1458_v59 }
  0x96   : > { %862 = vmatpush1.bf16.msra.mxu0 %v1460_v60  ;;  %948 = vmatpush1.bf16.msra.mxu1 %v1461_v61 }
  0x97   : > { %863 = vmatprep.subr.bf16.mxu0 %v1462_v62  ;;  %949 = vmatprep.subr.bf16.mxu1 %v1464_v63 }
  0x9a   : > { %864 = vmatpush1.bf16.msra.mxu0 %v1466_v0  ;;  %950 = vmatpush1.bf16.msra.mxu1 %v1467_v1 }
  0x9b   : > { %876 = vmatprep.subr.bf16.mxu0 %v1473_v2  ;;  %962 = vmatprep.subr.bf16.mxu1 %v1476_v3 }
  0x9d   : > { %866 = vmatmul.mubr.bf16.vlgmr.msra.gmra.mrb[0].mxu0 %v1468_v4  ;;  %952 = vmatmul.mubr.bf16.vlgmr.msra.gmra.mrb[0].mxu1 %v1468_v4 }
  0x9e   : > { %877 = vmatpush1.bf16.msra.mxu0 %v1471_v5  ;;  %963 = vmatpush1.bf16.msra.mxu1 %v1474_v6 }
  0x9f   : > { %878 = vmatprep.subr.bf16.mxu0 %v1479_v7  ;;  %964 = vmatprep.subr.bf16.mxu1 %v1482_v8 }
  0xa0   : > { %908 = vmatprep.mubr.bf16.mxu0 %v1674_v13  ;;  %994 = vmatprep.mubr.bf16.mxu1 %v1674_v13 }
  0xa2   : > { %879 = vmatpush1.bf16.msra.mxu0 %v1477_v9  ;;  %965 = vmatpush1.bf16.msra.mxu1 %v1480_v10 }
  0xa3   : > { %880 = vmatprep.subr.bf16.mxu0 %v1485_v11  ;;  %966 = vmatprep.subr.bf16.mxu1 %v1488_v12 }
  0xa6   : > { %881 = vmatpush1.bf16.msra.mxu0 %v1483_v14  ;;  %967 = vmatpush1.bf16.msra.mxu1 %v1486_v15 }
  0xa7   : > { %882 = vmatprep.subr.bf16.mxu0 %v1491_v16  ;;  %968 = vmatprep.subr.bf16.mxu1 %v1494_v17 }
  0xaa   : > { %883 = vmatpush1.bf16.msra.mxu0 %v1489_v18  ;;  %969 = vmatpush1.bf16.msra.mxu1 %v1492_v19 }
  0xab   : > { %884 = vmatprep.subr.bf16.mxu0 %v1497_v20  ;;  %970 = vmatprep.subr.bf16.mxu1 %v1500_v21 }
  0xae   : > { %885 = vmatpush1.bf16.msra.mxu0 %v1495_v22  ;;  %971 = vmatpush1.bf16.msra.mxu1 %v1498_v23 }
  0xaf   : > { %886 = vmatprep.subr.bf16.mxu0 %v1503_v24  ;;  %972 = vmatprep.subr.bf16.mxu1 %v1506_v25 }
  0xb2   : > { %887 = vmatpush1.bf16.msra.mxu0 %v1501_v26  ;;  %973 = vmatpush1.bf16.msra.mxu1 %v1504_v27 }
  0xb3   : > { %888 = vmatprep.subr.bf16.mxu0 %v1509_v28  ;;  %974 = vmatprep.subr.bf16.mxu1 %v1512_v29 }
  0xb6   : > { %889 = vmatpush1.bf16.msra.mxu0 %v1507_v30  ;;  %975 = vmatpush1.bf16.msra.mxu1 %v1510_v31 }
  0xb7   : > { %890 = vmatprep.subr.bf16.mxu0 %v1515_v32  ;;  %976 = vmatprep.subr.bf16.mxu1 %v1518_v33 }
  0xba   : > { %891 = vmatpush1.bf16.msra.mxu0 %v1513_v34  ;;  %977 = vmatpush1.bf16.msra.mxu1 %v1516_v35 }
  0xbd   : > { %909 = vmatmul.mubr.bf16.vlgmr.msra.gmra.mrb[0].mxu0 %v1519_v36  ;;  %995 = vmatmul.mubr.bf16.vlgmr.msra.gmra.mrb[0].mxu1 %v1519_v36 }
 0x190   : > { %v910_v41 = vpop.f32.mrb[0].mxu0  ;;  %v996_v42 = vpop.f32.mrb[0].mxu1  ;;  %1024 = sbr.rel (%p1267_p12) target bundleno = 417 (0x1a1), region = 44 }
 0x191   : > { %v1005_v45 = vadd.f32 %v910_v41, %v229_v37  ;;  %v1007_v46 = vadd.f32 %v996_v42, %v231_v38  ;;  %v912_v47 = vpop.f32.mrb[1].mxu0  ;;  %v998_v48 = vpop.f32.mrb[1].mxu1 }
 0x192   : > { %v1006_v51 = vadd.f32 %v912_v47, %v230_v39  ;;  %v1008_v52 = vadd.f32 %v998_v48, %v232_v40  ;;  %v914_v53 = vpop.f32.mrb[2].mxu0  ;;  %v1000_v54 = vpop.f32.mrb[2].mxu1 }
 0x193   : > { %1013 = vst [vmem:[#allocation2] sm:$0xff] %v1005_v45  ;;  %1015 = vst [vmem:[#allocation2 + $0x10] sm:$0xff] %v1007_v46  ;;  %v1009_v55 = vadd.f32 %v914_v53, %v233_v43  ;;  %v1011_v56 = vadd.f32 %v1000_v54, %v235_v44  ;;  %v916_v57 = vpop.f32.mrb[3].mxu0  ;;  %v1002_v58 = vpop.f32.mrb[3].mxu1 }
 0x194   : > { %1014 = vst [vmem:[#allocation2 + $0x8] sm:$0xff] %v1006_v51  ;;  %1016 = vst [vmem:[#allocation2 + $0x18] sm:$0xff] %v1008_v52  ;;  %v1010_v59 = vadd.f32 %v916_v57, %v234_v49  ;;  %v1012_v60 = vadd.f32 %v1002_v58, %v236_v50 }
 0x195   : > { %1017 = vst [vmem:[#allocation2 + $0x20] sm:$0xff] %v1009_v55  ;;  %1019 = vst [vmem:[#allocation2 + $0x30] sm:$0xff] %v1011_v56 }
 0x196   : > { %1018 = vst [vmem:[#allocation2 + $0x28] sm:$0xff] %v1010_v59  ;;  %1020 = vst [vmem:[#allocation2 + $0x38] sm:$0xff] %v1012_v60 }
 0x19a   : > { %v1025_v61 = vld [vmem:[#allocation2] sm:$0xff]  ;;  %v1027_v63 = vld [vmem:[#allocation2 + $0x10] sm:$0xff] }
 0x19b   : > { %v1026_v62 = vld [vmem:[#allocation2 + $0x8] sm:$0xff]  ;;  %v1028_v1 = vld [vmem:[#allocation2 + $0x18] sm:$0xff] }
 0x19c   : > { %v1279_v0 = vpack.c.bf16 %v1026_v62, %v1025_v61  ;;  %v1029_v2 = vld [vmem:[#allocation2 + $0x20] sm:$0xff]  ;;  %v1280_v4 = vpack.c.bf16 %v1028_v1, %v1027_v63  ;;  %v1031_v6 = vld [vmem:[#allocation2 + $0x30] sm:$0xff] }
 0x19d   : > { %v1030_v3 = vld [vmem:[#allocation2 + $0x28] sm:$0xff]  ;;  %v1032_v7 = vld [vmem:[#allocation2 + $0x38] sm:$0xff] }
 0x19e   : > { %v1281_v5 = vpack.c.bf16 %v1030_v3, %v1029_v2  ;;  %1057 = vst [vmem:[#allocation8] sm:$0xff] %v1279_v0  ;;  %v1282_v8 = vpack.c.bf16 %v1032_v7, %v1031_v6  ;;  %1058 = vst [vmem:[#allocation8 + $0x8] sm:$0xff] %v1280_v4 }
 0x1a0   : > { %1059 = vst [vmem:[#allocation8 + $0x10] sm:$0xff] %v1281_v5  ;;  %1060 = vst [vmem:[#allocation8 + $0x18] sm:$0xff] %v1282_v8 }
 0x1a1 PF: > { %p1947_p4 = scmp.eq.s32.totalorder %s1160_s15, 1  ;;  %s1675_s19 = smov [#allocation8]  }
 0x1a2   : > { %s1070_s3 = sshll.u32 %s1675_s19, 4  ;;  %s1071_s3 = int_to_ptr.vmem [resolvable:$true] %s1070_s3 }
 0x1a3   : > { %s1580_s7 = scalar_lea.vmem %s1071_s3, 512  ;;  %p1587_p0 = scmp.lt.s32.totalorder %s1071_s3, %s1071_s3 }
 0x1a4   : > { %p1581_p8 = scmp.ne.s32.totalorder %s1071_s3, %s1580_s7  ;;  %p1588_p10 = scmp.lt.s32.totalorder %s1580_s7, %s1580_s7 }
 0x1a6   : > { %p1582_p2 = pnand %p1581_p8, %p1947_p4  ;;  %p1589_p5 = por %p1588_p10, %p1587_p0 }
 0x1a8   : > { %p1583_p3 = pneg %p1582_p2 }
 0x1aa   : > { %p1590_p6 = pnand %p1589_p5, %p1583_p3 }
 0x1ac   : > { %1593 = shalt.err (!%p1590_p6)
}
 0x1ad   : > { %s1594_s15 = scalar_lea.hbm %s1993_s2, 512 }
 0x1ae   : > { %p1595_p11 = scmp.ne.s32.totalorder %s1993_s2, %s1594_s15  ;;  %p1600_p7 = scmp.lt.u32.totalorder %s1594_s15, %s1993_s2 }
 0x1b0   : > { %p1596_p13 = pnand %p1595_p11, %p1947_p4 }
 0x1b2   : > { %p1597_p1 = pneg %p1596_p13 }
 0x1b4   : > { %p1602_p9 = pnand %p1600_p7, %p1597_p1 }
 0x1b6   : > { %1605 = shalt.err (!%p1602_p9)
}
 0x1b7   : > { %s1676_s28 = smov 256   ;;  %s1677_s4 = smov 16  }
 0x1b8   : > { %1301 = dma.vmem_to_hbm [thread:$0]  (%p1947_p4), %s1071_s3, 512, %s1993_s2, [#allocation5], %s1676_s28, %s1676_s28, %s1677_s4  }
 0x1b9   : > { %1639 = dma.done.wait (%p1947_p4), [#allocation5], 512  }
 0x1ba   : > { %1641 = vsyncadd (%p1947_p4), [#allocation5], 4294966784 }
 0x1bb PF: > { %s19_s14 = sadd.s32 1, %s1664_s14   ;;  %s2001_s9 = smov %s1648_s10 }
 0x1bc   : > { %p16_p12 = scmp.ge.s32.totalorder %s19_s14, 4   ;;  %s2002_s10 = smov %s1652_s11 }
 0x1bd   : > { %s2003_s11 = smov %s1740_s20  ;;  %s2004_s12 = smov %s1660_s13 }
 0x1be   : > { %s2005_s13 = smov %s2007_s16  ;;  %18 = sbr.rel (!%p16_p12) target bundleno = 7 (0x7), region = 87 }
 0x1c5   :  { %1086 = vsyncpa [#allocation4], 1 }
 0x1c6   :  { %1088 = vsyncpa [#allocation4 + $0x1], 1 }
 0x1c7   :  { %1089 = vsyncpa [#allocation7], 1 }
 0x1c8   :  { %1091 = vsyncpa [#allocation7 + $0x1], 1 }
 0x1c9   :  { %1092 = vsyncpa [#allocation5], 1 }
 0x1ca   :  { %1094 = vsyncpa [#allocation5 + $0x1], 1 }

</bundles_post_ra>
